<compile_context>
chip_gen: v6e
topology: v6e:2x2x1
jax: 0.10.0
libtpu: 0.0.40
codegen_flags: <defaults>
</compile_context>

<pallas_src>
import functools

import jax
import jax.numpy as jnp
from jax.experimental import pallas as pl
from jax.experimental.pallas import tpu as pltpu

BN_EPS = 1e-5   # nn.BatchNorm2d default eps
LN_EPS = 1e-5   # nn.LayerNorm default eps
_VMEM_LIMIT = 32 * 1024 * 1024          # explicit scoped-VMEM cap (v5e/v6e/v7x safe)
_BLOCK_BYTES = 2 << 20                  # ~2 MiB per block -> ~85% of HBM roofline


# ----------------------------- tiling helper --------------------------------

def _row_tile(rows, bytes_per_row, target_bytes=_BLOCK_BYTES):
    """Largest row tile (multiple of 8, preferring one that divides `rows`)
    whose block stays under `target_bytes`."""
    if rows <= 8 or rows * bytes_per_row <= target_bytes:
        return rows
    cap = max(8, int(target_bytes // bytes_per_row) // 8 * 8)
    cap = min(cap, (rows // 8) * 8)
    for rt in range(cap, 7, -8):        # prefer a divisor -> no masked tail block
        if rows % rt == 0:
            return rt
    return cap


# ----------------------------- kernels --------------------------------------

def eval_affine_kernel(x_ref, scale_ref, shift_ref, o_ref):
    """Eval-mode PTNorm == RepBN(eval): one per-channel affine.

    x block: (rt, D) rows of the flattened [T*B*L, D] activation.
    scale = gamma/sqrt(rvar+eps) + alpha ; shift = beta - rmean*gamma/sqrt(rvar+eps).
    """
    x = x_ref[...].astype(jnp.float32)
    o_ref[...] = (x * scale_ref[...] + shift_ref[...]).astype(o_ref.dtype)


def bn_stats_kernel(x_ref, sum_ref, sq_ref, *, rt, valid_rows):
    """Per-tile partial sum / sum-of-squares over a (rt, D) row tile of the
    flattened activation ("parallel" grid; partials combined host-side)."""
    x = x_ref[...].astype(jnp.float32)                       # (rt, D)
    if valid_rows is not None:                               # ragged tail -> mask
        row = jax.lax.broadcasted_iota(jnp.int32, x.shape, 0) + pl.program_id(0) * rt
        x = jnp.where(row < valid_rows, x, 0.0)
    sum_ref[...] = jnp.sum(x, axis=0, keepdims=True).reshape(1, 1, -1)
    sq_ref[...] = jnp.sum(x * x, axis=0, keepdims=True).reshape(1, 1, -1)


def train_blend_kernel(x_ref, lnw_ref, scale_ref, shift_ref, o_ref,
                       *, ln_on, bn_on, inv_n):
    """Training-mode PTNorm:  lamda*LN(x) + (1-lamda)*RepBN_train(x).

    RepBN(train) is folded host-side into per-channel scale (batch stats,
    gamma/beta, alpha, (1-lamda)); lamda is folded into the LN weight; LN bias
    and BN shift are pre-combined into one per-(t,d) shift. Pure VPU/XLU work.
    """
    x = x_ref[...].astype(jnp.float32)                       # (T, 1, tl, D)
    acc = shift_ref[...]                                     # (T, 1, 1, D)
    if bn_on:
        acc = x * scale_ref[...] + acc                       # (1-lamda)*RepBN_train(x)
    if ln_on:
        # LayerNorm over (T, D) per (l, b) position (biased variance).
        xs = jnp.sum(x, axis=0, keepdims=True)               # VPU adds over T
        mu = jnp.sum(xs, axis=3, keepdims=True) * inv_n      # one lane reduce (XLU)
        d = x - mu
        ds = jnp.sum(d * d, axis=0, keepdims=True)
        var = jnp.sum(ds, axis=3, keepdims=True) * inv_n
        acc = d * jax.lax.rsqrt(var + LN_EPS) * lnw_ref[...] + acc
    o_ref[...] = acc.astype(o_ref.dtype)


# ----------------------------- wrappers --------------------------------------

def _ptnorm_eval(x, scale, shift):
    T, B, L, D = x.shape
    rows = T * B * L
    xf = x.reshape(rows, D)                 # contiguous -> free layout view
    rt = _row_tile(rows, D * 4)
    out = pl.pallas_call(
        eval_affine_kernel,
        out_shape=jax.ShapeDtypeStruct((rows, D), x.dtype),
        grid=(pl.cdiv(rows, rt),),
        in_specs=[
            pl.BlockSpec((rt, D), lambda i: (i, 0)),
            pl.BlockSpec((1, D), lambda i: (0, 0)),
            pl.BlockSpec((1, D), lambda i: (0, 0)),
        ],
        out_specs=pl.BlockSpec((rt, D), lambda i: (i, 0)),
        compiler_params=pltpu.CompilerParams(
            dimension_semantics=("parallel",),
            vmem_limit_bytes=_VMEM_LIMIT),
    )(xf, scale, shift)
    return out.reshape(T, B, L, D)


def _bn_batch_stats(x):
    """Per-channel (mean, biased var) over (T, L, B) via per-tile partials."""
    T, B, L, D = x.shape
    rows = T * B * L
    xf = x.reshape(rows, D)
    rt = _row_tile(rows, D * 4)
    nt = pl.cdiv(rows, rt)
    valid_rows = None if nt * rt == rows else rows
    psum, psq = pl.pallas_call(
        functools.partial(bn_stats_kernel, rt=rt, valid_rows=valid_rows),
        out_shape=(jax.ShapeDtypeStruct((nt, 1, D), jnp.float32),
                   jax.ShapeDtypeStruct((nt, 1, D), jnp.float32)),
        grid=(nt,),
        in_specs=[pl.BlockSpec((rt, D), lambda i: (i, 0))],
        out_specs=(pl.BlockSpec((1, 1, D), lambda i: (i, 0, 0)),
                   pl.BlockSpec((1, 1, D), lambda i: (i, 0, 0))),
        compiler_params=pltpu.CompilerParams(
            dimension_semantics=("parallel",),
            vmem_limit_bytes=_VMEM_LIMIT),
    )(xf)
    n = float(rows)
    mean = psum.sum(axis=0).reshape(1, D) / n
    # TODO(synk): E[x^2]-E[x]^2 in f32 can lose precision for very large
    # T*B*L with strongly non-centered activations; fine at these sizes.
    var = psq.sum(axis=0).reshape(1, D) / n - mean * mean
    return mean, var


def _ptnorm_train(x, params, lamda):
    T, B, L, D = x.shape
    ln_on = (lamda != 0.0)
    bn_on = (lamda != 1.0)

    gamma = params["bn_gamma"].reshape(1, D).astype(jnp.float32)
    beta = params["bn_beta"].reshape(1, D).astype(jnp.float32)
    alpha = params["alpha"].astype(jnp.float32)

    # ---- pass 1: BatchNorm2d training-mode batch statistics (skipped in warm-up) ----
    if bn_on:
        mean, var = _bn_batch_stats(x)
        inv = jax.lax.rsqrt(var + BN_EPS)
        bn_scale = gamma * inv + alpha               # RepBN(train): bn affine + alpha*x
        bn_shift = beta - mean * gamma * inv
    else:
        bn_scale = jnp.zeros((1, D), jnp.float32)
        bn_shift = jnp.zeros((1, D), jnp.float32)

    lam = jnp.float32(lamda)
    scale = ((1.0 - lam) * bn_scale).reshape(1, 1, 1, D)
    lnw = (lam * params["ln_w"].astype(jnp.float32)).reshape(T, 1, 1, D)
    # LN bias + BN shift pre-combined: one fewer add per element in-kernel.
    shift = ((lam * params["ln_b"].astype(jnp.float32)).reshape(T, 1, 1, D)
             + ((1.0 - lam) * bn_shift).reshape(1, 1, 1, D))

    # ---- pass 2: fused LayerNorm + blend, tiled over (B, L) ----
    tl = _row_tile(L, T * D * 4)
    grid = (B, pl.cdiv(L, tl))
    out = pl.pallas_call(
        functools.partial(train_blend_kernel, ln_on=ln_on, bn_on=bn_on,
                          inv_n=1.0 / float(T * D)),
        out_shape=jax.ShapeDtypeStruct((T, B, L, D), x.dtype),
        grid=grid,
        in_specs=[
            pl.BlockSpec((T, 1, tl, D), lambda b, l: (0, b, l, 0)),
            pl.BlockSpec((T, 1, 1, D), lambda b, l: (0, 0, 0, 0)),
            pl.BlockSpec((1, 1, 1, D), lambda b, l: (0, 0, 0, 0)),
            pl.BlockSpec((T, 1, 1, D), lambda b, l: (0, 0, 0, 0)),
        ],
        out_specs=pl.BlockSpec((T, 1, tl, D), lambda b, l: (0, b, l, 0)),
        compiler_params=pltpu.CompilerParams(
            dimension_semantics=("parallel", "parallel"),
            vmem_limit_bytes=_VMEM_LIMIT),
    )(x, lnw, scale, shift)
    return out


def ptnorm_advanced_forward(x, params, state, training):
    """Forward of PTNorm_Advanced. x: [T,B,L,D]. Returns (y, new_state)."""
    if not training:
        D = x.shape[-1]
        inv = jax.lax.rsqrt(params["bn_rvar"].astype(jnp.float32) + BN_EPS)
        gamma = params["bn_gamma"].astype(jnp.float32)
        scale = (gamma * inv + params["alpha"].astype(jnp.float32)).reshape(1, D)
        shift = (params["bn_beta"].astype(jnp.float32)
                 - params["bn_rmean"].astype(jnp.float32) * gamma * inv).reshape(1, D)
        return _ptnorm_eval(x, scale, shift), state

    warm, it, total = state["warm"], state["iter"], state["total_step"]
    if warm > 0:
        lamda = 1.0
    elif total == 0:
        lamda = 0.0
    else:
        lamda = state["r0"] * float(it) / float(total)
    y = _ptnorm_train(x, params, lamda)
    new_state = dict(state)
    if warm > 0:
        new_state["warm"] = warm - 1
    if it > 0:
        new_state["iter"] = it - 1
    # TODO(synk): BatchNorm2d running-mean/var momentum update (stateful buffer,
    # does not affect the forward output) is not modelled here.
    return y, new_state


# ----------------------------- reference (pure JAX) --------------------------

def _reference_forward(x, params, lamda, training):
    gamma, beta, alpha = params["bn_gamma"], params["bn_beta"], params["alpha"]
    if not training:
        xq = jnp.transpose(x, (0, 3, 2, 1))                     # (T, D, L, B)
        inv = 1.0 / jnp.sqrt(params["bn_rvar"] + BN_EPS)
        x2 = ((xq - params["bn_rmean"][None, :, None, None]) * inv[None, :, None, None]
              * gamma[None, :, None, None] + beta[None, :, None, None] + alpha * xq)
        return jnp.transpose(x2, (0, 3, 2, 1))
    # LN branch
    xp = jnp.transpose(x, (2, 1, 0, 3))                         # (L, B, T, D)
    mu = jnp.mean(xp, axis=(-2, -1), keepdims=True)
    var = jnp.mean((xp - mu) ** 2, axis=(-2, -1), keepdims=True)
    x1 = (xp - mu) / jnp.sqrt(var + LN_EPS) * params["ln_w"] + params["ln_b"]
    x1 = jnp.transpose(x1, (2, 1, 0, 3))
    # RepBN training branch
    xq = jnp.transpose(x, (0, 3, 2, 1))                         # (T, D, L, B)
    m = jnp.mean(xq, axis=(0, 2, 3), keepdims=True)
    v = jnp.mean((xq - m) ** 2, axis=(0, 2, 3), keepdims=True)
    x2 = ((xq - m) / jnp.sqrt(v + BN_EPS) * gamma[None, :, None, None]
          + beta[None, :, None, None] + alpha * xq)
    x2 = jnp.transpose(x2, (0, 3, 2, 1))
    return lamda * x1 + (1.0 - lamda) * x2


# ----------------------------- parameters ------------------------------------

def init_params(key, T, D):
    ks = jax.random.split(key, 7)
    return dict(
        ln_w=1.0 + 0.1 * jax.random.normal(ks[0], (T, D), jnp.float32),
        ln_b=0.1 * jax.random.normal(ks[1], (T, D), jnp.float32),
        bn_gamma=1.0 + 0.1 * jax.random.normal(ks[2], (D,), jnp.float32),
        bn_beta=0.1 * jax.random.normal(ks[3], (D,), jnp.float32),
        bn_rmean=0.1 * jax.random.normal(ks[4], (D,), jnp.float32),
        bn_rvar=1.0 + 0.1 * jax.random.uniform(ks[5], (D,), jnp.float32),
        alpha=jnp.float32(1.0) + 0.1 * jax.random.normal(ks[6], (), jnp.float32),
    )


if __name__ == "__main__":
    # PTNorm_Advanced(dim=D, T=T, step=10, warm=1, r0=1.0); x is [T, B, L, D].
    T, B, L, D = 4, 2, 8, 128          # D multiple of 128 -> lane-dense blocks
    key = jax.random.PRNGKey(0)
    kx, kp = jax.random.split(key)
    x = jax.random.normal(kx, (T, B, L, D), jnp.float32)
    params = init_params(kp, T, D)
    state = dict(warm=1, iter=10, total_step=10, r0=1.0)

    # eval-mode forward (the inference path)
    y_eval, _ = ptnorm_advanced_forward(x, params, state, training=False)
    y_eval = jax.block_until_ready(y_eval)
    ref_eval = _reference_forward(x, params, 0.0, training=False)
    assert y_eval.shape == (T, B, L, D) and y_eval.dtype == jnp.float32
    assert jnp.allclose(y_eval, ref_eval, atol=1e-4, rtol=1e-4)

    # a few training-mode forwards (warm-up lamda=1.0, then the lamda schedule)
    st = state
    for _ in range(3):
        warm, it, total = st["warm"], st["iter"], st["total_step"]
        lam = 1.0 if warm > 0 else (0.0 if total == 0 else st["r0"] * float(it) / float(total))
        y_tr, st = ptnorm_advanced_forward(x, params, st, training=True)
        y_tr = jax.block_until_ready(y_tr)
        ref_tr = _reference_forward(x, params, lam, training=True)
        assert jnp.allclose(y_tr, ref_tr, atol=1e-4, rtol=1e-4)

    # direct check of the lamda == 0 (pure RepBN-train) kernel path
    y0 = jax.block_until_ready(_ptnorm_train(x, params, 0.0))
    ref0 = _reference_forward(x, params, 0.0, training=True)
    assert jnp.allclose(y0, ref0, atol=1e-4, rtol=1e-4)

    print("KERNEL_OK")
</pallas_src>

<mosaic_0001>
module attributes {stable_mosaic.version = 11 : i64} {
  func.func @eval_affine_kernel(%arg0: i32, %arg1: memref<64x128xf32, #tpu.memory_space<vmem>>, %arg2: memref<1x128xf32, #tpu.memory_space<vmem>>, %arg3: memref<1x128xf32, #tpu.memory_space<vmem>>, %arg4: memref<64x128xf32, #tpu.memory_space<vmem>>) attributes {dimension_semantics = [#tpu.dimension_semantics<parallel>], iteration_bounds = array<i64: 1>, scalar_prefetch = 0 : i64, scratch_operands = 0 : i64, tpu.core_type = #tpu.core_type<tc>, window_params = [{transform_indices = @transform_0, window_bounds = array<i64: 64, 128>}, {pipeline_mode = #tpu.pipeline_mode<synchronous>, transform_indices = @transform_1, window_bounds = array<i64: 1, 128>}, {pipeline_mode = #tpu.pipeline_mode<synchronous>, transform_indices = @transform_2, window_bounds = array<i64: 1, 128>}, {transform_indices = @transform_3, window_bounds = array<i64: 64, 128>}]} {
    %c0 = arith.constant 0 : index
    %c0_0 = arith.constant 0 : index
    %0 = vector.load %arg1[%c0, %c0_0] : memref<64x128xf32, #tpu.memory_space<vmem>>, vector<64x128xf32>
    %c0_1 = arith.constant 0 : index
    %c0_2 = arith.constant 0 : index
    %1 = vector.load %arg2[%c0_1, %c0_2] : memref<1x128xf32, #tpu.memory_space<vmem>>, vector<1x128xf32>
    %2 = vector.broadcast %1 : vector<1x128xf32> to vector<64x128xf32>
    %3 = arith.mulf %0, %2 : vector<64x128xf32>
    %c0_3 = arith.constant 0 : index
    %c0_4 = arith.constant 0 : index
    %4 = vector.load %arg3[%c0_3, %c0_4] : memref<1x128xf32, #tpu.memory_space<vmem>>, vector<1x128xf32>
    %5 = vector.broadcast %4 : vector<1x128xf32> to vector<64x128xf32>
    %6 = arith.addf %3, %5 : vector<64x128xf32>
    %c0_5 = arith.constant 0 : index
    %c0_6 = arith.constant 0 : index
    %7 = vector.load %arg4[%c0_5, %c0_6] : memref<64x128xf32, #tpu.memory_space<vmem>>, vector<64x128xf32>
    tpu.vector_store %arg4[%c0_5, %c0_6], %6 {strides = array<i32>} : memref<64x128xf32, #tpu.memory_space<vmem>>, vector<64x128xf32>,
    return
  }
  func.func @transform_0(%arg0: i32) -> (i32, i32) {
    %c0_i32 = arith.constant 0 : i32
    %c0_i32_0 = arith.constant 0 : i32
    return %arg0, %c0_i32 : i32, i32
  }
  func.func @transform_1(%arg0: i32) -> (i32, i32) {
    %c0_i32 = arith.constant 0 : i32
    %c0_i32_0 = arith.constant 0 : i32
    %c0_i32_1 = arith.constant 0 : i32
    return %c0_i32, %c0_i32_0 : i32, i32
  }
  func.func @transform_2(%arg0: i32) -> (i32, i32) {
    %c0_i32 = arith.constant 0 : i32
    %c0_i32_0 = arith.constant 0 : i32
    %c0_i32_1 = arith.constant 0 : i32
    return %c0_i32, %c0_i32_0 : i32, i32
  }
  func.func @transform_3(%arg0: i32) -> (i32, i32) {
    %c0_i32 = arith.constant 0 : i32
    %c0_i32_0 = arith.constant 0 : i32
    return %arg0, %c0_i32 : i32, i32
  }
}

</mosaic_0001>

<bundles_post_ra>
// kernel: tpu_custom_call.1
= control target key start
LH: loop header
LB: loop body
LE: loop exit
PB: predicated region body
PF: predicated region fallthrough
CT: control target
= control target key end

     0   :  { %8 = vsyncpa [#allocation3], 0  ;;  %s184_s0 = inlined_call_operand.hbm [shape: f32[64,128], index: 0, kind: input, shape index: {}]   ;;  %s185_s1 = inlined_call_operand.vmem [shape: f32[1,128], index: 1, kind: input, shape index: {}]   ;;  %s186_s2 = inlined_call_operand.vmem [shape: f32[1,128], index: 2, kind: input, shape index: {}]   ;;  %s187_s3 = inlined_call_operand.hbm [shape: f32[64,128], index: 3, kind: output, shape index: {}]  }
   0x1   :  { %9 = vsyncpa [#allocation4], 0  ;;  %s142_s12 = smov [#allocation2]  }
   0x2   :  { %s15_s13 = sshll.u32 %s142_s12, 4  ;;  %s16_s13 = int_to_ptr.vmem [resolvable:$true] %s15_s13 }
   0x3   :  { %s106_s14 = scalar_lea.vmem %s16_s13, 1024  ;;  %p111_p1 = scmp.lt.s32.totalorder %s16_s13, %s16_s13 }
   0x4   :  { %p107_p0 = scmp.ne.s32.totalorder %s16_s13, %s106_s14  ;;  %p112_p2 = scmp.lt.s32.totalorder %s106_s14, %s106_s14 }
   0x6   :  { %p113_p3 = por %p112_p2, %p111_p1 }
   0x8   :  { %p114_p4 = pnand %p113_p3, %p107_p0 }
   0xa   :  { %117 = shalt.err (!%p114_p4)
}
   0xb   :  { %s143_s15 = smov 128   ;;  %s144_s16 = smov 8  }
   0xc   :  { %21 = dma.hbm_to_vmem [thread:$0]  %s184_s0, 1024, %s16_s13, [#allocation3], %s143_s15, %s143_s15, %s144_s16  }
   0xd   :  { %138 = dma.done.wait [#allocation3], 1024  }
   0xe   :  { %139 = vsyncadd [#allocation3], 4294966272  ;;  %v29_v0 = vld [vmem:[#allocation2] sm:$0xff]  ;;  %v30_v4 = vld [vmem:[#allocation2 + $0x8] sm:$0xff]  ;;  %s145_s0 = smov [#allocation5]  }
   0xf   :  { %v92_v1 = vld [vmem:[%s185_s1] ss:$0 sm:$0xff]  ;;  %v31_v5 = vld [vmem:[#allocation2 + $0x10] sm:$0xff]  ;;  %v32_v6 = vld [vmem:[#allocation2 + $0x18] sm:$0xff]  ;;  %s80_s1 = sshll.u32 %s145_s0, 4  ;;  %s81_s1 = int_to_ptr.vmem [resolvable:$true] %s80_s1 }
  0x10   :  { %v93_v2 = vld [vmem:[%s186_s2] ss:$0 sm:$0xff]  ;;  %v44_v3 = vmul.f32 %v92_v1, %v29_v0  ;;  %v45_v7 = vmul.f32 %v92_v1, %v30_v4  ;;  %v46_v8 = vmul.f32 %v92_v1, %v31_v5  ;;  %v47_v9 = vmul.f32 %v92_v1, %v32_v6  ;;  %v34_v11 = vld [vmem:[#allocation2 + $0x28] sm:$0xff]  ;;  %v35_v12 = vld [vmem:[#allocation2 + $0x30] sm:$0xff]  ;;  %s118_s2 = scalar_lea.vmem %s81_s1, 1024  ;;  %p123_p6 = scmp.lt.s32.totalorder %s81_s1, %s81_s1 }
  0x11   :  { %v33_v10 = vld [vmem:[#allocation2 + $0x20] sm:$0xff]  ;;  %v49_v15 = vmul.f32 %v92_v1, %v34_v11  ;;  %v50_v16 = vmul.f32 %v92_v1, %v35_v12  ;;  %v36_v17 = vld [vmem:[#allocation2 + $0x38] sm:$0xff]  ;;  %p119_p5 = scmp.ne.s32.totalorder %s81_s1, %s118_s2  ;;  %p124_p7 = scmp.lt.s32.totalorder %s118_s2, %s118_s2 }
  0x12   :  { %v59_v13 = vadd.f32 %v93_v2, %v44_v3  ;;  %v48_v14 = vmul.f32 %v92_v1, %v33_v10  ;;  %v60_v18 = vadd.f32 %v93_v2, %v45_v7  ;;  %v61_v19 = vadd.f32 %v93_v2, %v46_v8 }
  0x13   :  { %v62_v20 = vadd.f32 %v93_v2, %v47_v9  ;;  %v51_v21 = vmul.f32 %v92_v1, %v36_v17  ;;  %v64_v23 = vadd.f32 %v93_v2, %v49_v15  ;;  %v65_v24 = vadd.f32 %v93_v2, %v50_v16  ;;  %p125_p8 = por %p124_p7, %p123_p6 }
  0x14   :  { %67 = vst [vmem:[#allocation5] sm:$0xff] %v59_v13  ;;  %v63_v22 = vadd.f32 %v93_v2, %v48_v14  ;;  %68 = vst [vmem:[#allocation5 + $0x8] sm:$0xff] %v60_v18 }
  0x15   :  { %69 = vst [vmem:[#allocation5 + $0x10] sm:$0xff] %v61_v19  ;;  %70 = vst [vmem:[#allocation5 + $0x18] sm:$0xff] %v62_v20  ;;  %v66_v25 = vadd.f32 %v93_v2, %v51_v21  ;;  %p126_p9 = pnand %p125_p8, %p119_p5 }
  0x16   :  { %71 = vst [vmem:[#allocation5 + $0x20] sm:$0xff] %v63_v22  ;;  %72 = vst [vmem:[#allocation5 + $0x28] sm:$0xff] %v64_v23 }
  0x17   :  { %73 = vst [vmem:[#allocation5 + $0x30] sm:$0xff] %v65_v24  ;;  %74 = vst [vmem:[#allocation5 + $0x38] sm:$0xff] %v66_v25 }
  0x18   :  { %129 = shalt.err (!%p126_p9)
}
  0x19   :  { %86 = dma.vmem_to_hbm [thread:$0]  %s81_s1, 1024, %s187_s3, [#allocation4], %s143_s15, %s143_s15, %s144_s16  }
  0x1a   :  { %140 = dma.done.wait [#allocation4], 1024  }
  0x1b   :  { %141 = vsyncadd [#allocation4], 4294966272 }
  0x1c   :  { %90 = vsyncpa [#allocation3], 1 }
  0x1d   :  { %91 = vsyncpa [#allocation4], 1 }

</bundles_post_ra>
